<compile_context>
chip_gen: v7x
topology: tpu7x:2x2x1
jax: 0.10.0
libtpu: 0.0.40
codegen_flags: <defaults>
</compile_context>

<pallas_src>
import math

import jax
import jax.numpy as jnp
from jax.experimental import pallas as pl
from jax.experimental.pallas import tpu as pltpu


def _round_up(n, m):
    return ((n + m - 1) // m) * m


def _gru_kernel(x_ref, h_ref, slab_ref, h_out_ref, p_out_ref):
    x = x_ref[...]                        # [B, Ip]
    h = h_ref[...]                        # [B, P] lane-dense (lanes >= H zero)
    Ip = x.shape[1]
    P = h.shape[1]

    # Static (trace-time) row offsets into the weight slab; all multiples of 8.
    gb_off = Ip            # gate biases   [8 rows]   (row 0 used)
    bo_off = Ip + 8        # head bias     [8 rows]   (row 0, block 0 used)
    hm_off = Ip + 16       # [Wzh|Wrh|Whh] [P rows]
    wo_off = hm_off + P    # diff head W   [P rows]   (block 0 used)

    def sigmoid(t):
        return 1.0 / (1.0 + jnp.exp(-t))

    # --- x-side fused projection: lane blocks [ z | r | h_hat ] -------------
    gx = jnp.dot(x, slab_ref[0:Ip, :], preferred_element_type=jnp.float32)
    gx = gx + slab_ref[gb_off:gb_off + 1, :]                        # [B, 3P]

    # --- h-side fused z|r projection (blocks 0,1 of the h-matrix section) ---
    gh = jnp.dot(h, slab_ref[hm_off:hm_off + P, 0:2 * P],
                 preferred_element_type=jnp.float32)                # [B, 2P]

    zr = sigmoid(gx[:, 0:2 * P] + gh)                               # [B, 2P]
    z = zr[:, 0:P]                                                  # 128-aligned view
    r = zr[:, P:2 * P]                                              # 128-aligned view

    # --- candidate state: (r*h) @ Whh (block 2 of the h-matrix section) -----
    ch = jnp.dot(r * h, slab_ref[hm_off:hm_off + P, 2 * P:3 * P],
                 preferred_element_type=jnp.float32)                # [B, P]
    h_hat = jnp.tanh(gx[:, 2 * P:3 * P] + ch)                       # [B, P]

    h_new = (1.0 - z) * h + z * h_hat                               # [B, P]

    # --- output head: 2-class softmax == sigmoid of the logit difference ----
    # (difference weights pre-folded offline; only lanes 0,1 are meaningful)
    logits_d = jnp.dot(h_new, slab_ref[wo_off:wo_off + P, 0:P],
                       preferred_element_type=jnp.float32)          # [B, P]
    p = sigmoid(logits_d + slab_ref[bo_off:bo_off + 1, 0:P])        # [B, P]

    h_out_ref[...] = h_new        # full-vreg unmasked store (lane-dense state)
    p_out_ref[...] = p            # lane-dense store; wrapper slices [:, :2]


def _basic_gru_forward(x_pad, h_pad, slab):
    """One GRU step on padded buffers. Returns (h_pad_new [B,P], pre_label [B,2])."""
    B, P = h_pad.shape
    vmem = pl.BlockSpec(memory_space=pltpu.MemorySpace.VMEM)
    h_new_pad, p_full = pl.pallas_call(
        _gru_kernel,
        out_shape=(jax.ShapeDtypeStruct((B, P), jnp.float32),
                   jax.ShapeDtypeStruct((B, P), jnp.float32)),
        in_specs=[vmem, vmem, vmem],
        out_specs=(vmem, vmem),
        input_output_aliases={1: 0},   # hidden state updated in place
    )(x_pad, h_pad, slab)
    return h_new_pad, p_full[:, :2]


# Donate the padded hidden state so the alias is actually realized (no
# defensive copy of h before the custom call).
basic_gru_step = jax.jit(_basic_gru_forward, donate_argnums=(1,))


def init_params(key, input_size, hidden_size):
    """Raw params mirroring BasicGRU.init_weights (uniform +-1/sqrt(H))."""
    stdv = 1.0 / math.sqrt(hidden_size)
    ks = jax.random.split(key, 8)

    def u(k, shape):
        return jax.random.uniform(k, shape, jnp.float32, -stdv, stdv)

    I, H = input_size, hidden_size
    return dict(
        W_z=u(ks[0], (I + H, H)), b_z=u(ks[1], (H,)),
        W_r=u(ks[2], (I + H, H)), b_r=u(ks[3], (H,)),
        W_h=u(ks[4], (I + H, H)), b_h=u(ks[5], (H,)),
        # nn.Linear(H, 2): torch weight is [2, H]; store the transpose [H, 2].
        W_out=u(ks[6], (H, 2)), b_out=u(ks[7], (2,)),
    )


def pack_params(raw, input_size, hidden_size):
    """Fuse + zero-pad raw weights into ONE lane/sublane-aligned f32 slab.

    Slab layout (rows, all section offsets are multiples of 8; width = 3*P,
    P = 128-lane per-gate block):
      [0      : Ip     ]  x-side gates  [Wzx | Wrx | Whx]   (Ip = round_up(I,8))
      [Ip     : Ip+8   ]  gate biases   [b_z | b_r | b_h]   (row 0 used)
      [Ip+8   : Ip+16  ]  head bias diff [b0-b1, b1-b0, 0..] (row 0, block 0)
      [Ip+16  : Ip+16+P]  h-side mats   [Wzh | Wrh | Whh]   (rows >= H zero)
      [Ip+16+P:        ]  head diff W   [w0-w1 | w1-w0 | 0] in block 0
    """
    I, H = input_size, hidden_size
    Ip = _round_up(I, 8)
    P = max(128, _round_up(H, 128))
    W3 = 3 * P

    def place(block_mats, rows):
        out = jnp.zeros((rows, W3), jnp.float32)
        for blk, m in block_mats:
            out = out.at[:m.shape[0], blk * P: blk * P + m.shape[1]].set(m)
        return out

    Wz, Wr, Wh = raw["W_z"], raw["W_r"], raw["W_h"]
    gwx = place([(0, Wz[:I]), (1, Wr[:I]), (2, Wh[:I])], Ip)               # [Ip,3P]
    gb = place([(0, raw["b_z"][None]), (1, raw["b_r"][None]),
                (2, raw["b_h"][None])], 8)                                 # [8, 3P]

    # 2-class softmax as difference-weight sigmoid: p_c = sigmoid(l_c - l_other)
    wo, bo = raw["W_out"], raw["b_out"]
    wo_d = jnp.stack([wo[:, 0] - wo[:, 1], wo[:, 1] - wo[:, 0]], axis=1)   # [H, 2]
    bo_d = jnp.stack([bo[0] - bo[1], bo[1] - bo[0]])[None, :]              # [1, 2]
    bo_row = place([(0, bo_d)], 8)                                         # [8, 3P]

    hmat = place([(0, Wz[I:]), (1, Wr[I:]), (2, Wh[I:])], P)               # [P, 3P]
    womat = place([(0, wo_d)], P)                                          # [P, 3P]

    return jnp.concatenate([gwx, gb, bo_row, hmat, womat], axis=0)         # [*, 3P]


def pad_inputs(x, h, input_size, hidden_size):
    """Zero-pad x to [B, round_up(I,8)] and h to lane-dense [B, P]."""
    Ip = _round_up(input_size, 8)
    P = max(128, _round_up(hidden_size, 128))
    x_pad = jnp.pad(x, ((0, 0), (0, Ip - input_size)))
    h_pad = jnp.pad(h, ((0, 0), (0, P - hidden_size)))
    return x_pad, h_pad


def _reference(x, h, raw):
    """Pure-JAX mirror of the PyTorch forward (highest-precision matmuls)."""
    hp = jax.lax.Precision.HIGHEST
    combined = jnp.concatenate([x, h], axis=1)
    z = jax.nn.sigmoid(jnp.dot(combined, raw["W_z"], precision=hp) + raw["b_z"])
    r = jax.nn.sigmoid(jnp.dot(combined, raw["W_r"], precision=hp) + raw["b_r"])
    combined2 = jnp.concatenate([x, r * h], axis=1)
    h_hat = jnp.tanh(jnp.dot(combined2, raw["W_h"], precision=hp) + raw["b_h"])
    h_new = (1.0 - z) * h + z * h_hat
    logits = jnp.dot(h_new, raw["W_out"], precision=hp) + raw["b_out"]
    return h_new, jax.nn.softmax(logits, axis=1)


if __name__ == "__main__":
    B = 8
    INPUT_SIZE = 16
    HIDDEN_SIZE = 32

    key = jax.random.PRNGKey(0)
    k_p, k_x, k_h = jax.random.split(key, 3)

    raw = init_params(k_p, INPUT_SIZE, HIDDEN_SIZE)
    slab = pack_params(raw, INPUT_SIZE, HIDDEN_SIZE)

    x = jax.random.normal(k_x, (B, INPUT_SIZE), jnp.float32)
    h0 = jax.random.normal(k_h, (B, HIDDEN_SIZE), jnp.float32)

    # Compute the pure-JAX reference BEFORE the kernel call (the padded state
    # buffer handed to the kernel is donated).
    h_ref, p_ref = _reference(x, h0, raw)
    h_ref, p_ref = jax.block_until_ready((h_ref, p_ref))

    x_pad, h_pad = pad_inputs(x, h0, INPUT_SIZE, HIDDEN_SIZE)
    h_new_pad, pre_label = basic_gru_step(x_pad, h_pad, slab)
    h_new_pad, pre_label = jax.block_until_ready((h_new_pad, pre_label))

    h_new = h_new_pad[:, :HIDDEN_SIZE]

    assert jnp.allclose(h_new, h_ref, atol=1e-4, rtol=1e-4), \
        float(jnp.max(jnp.abs(h_new - h_ref)))
    assert jnp.allclose(pre_label, p_ref, atol=1e-4, rtol=1e-4), \
        float(jnp.max(jnp.abs(pre_label - p_ref)))
    # Padded lanes of the carried state must stay exactly zero (loop-safe).
    assert bool(jnp.all(h_new_pad[:, HIDDEN_SIZE:] == 0.0))

    print("KERNEL_OK")
</pallas_src>

<mosaic_0001>
module attributes {stable_mosaic.version = 11 : i64} {
  func.func @_gru_kernel(%arg0: memref<8x16xf32, #tpu.memory_space<vmem>>, %arg1: memref<8x128xf32, #tpu.memory_space<vmem>>, %arg2: memref<288x384xf32, #tpu.memory_space<vmem>>, %arg3: memref<8x128xf32, #tpu.memory_space<vmem>>, %arg4: memref<8x128xf32, #tpu.memory_space<vmem>>) attributes {dimension_semantics = [], scalar_prefetch = 0 : i64, scratch_operands = 0 : i64, tpu.core_type = #tpu.core_type<tc>} {
    %c0 = arith.constant 0 : index
    %c0_0 = arith.constant 0 : index
    %0 = vector.load %arg0[%c0, %c0_0] : memref<8x16xf32, #tpu.memory_space<vmem>>, vector<8x16xf32>
    %c0_1 = arith.constant 0 : index
    %c0_2 = arith.constant 0 : index
    %1 = vector.load %arg1[%c0_1, %c0_2] : memref<8x128xf32, #tpu.memory_space<vmem>>, vector<8x128xf32>
    %c0_3 = arith.constant 0 : index
    %c0_4 = arith.constant 0 : index
    %2 = vector.load %arg2[%c0_3, %c0_4] : memref<288x384xf32, #tpu.memory_space<vmem>>, vector<16x384xf32>
    %cst = arith.constant dense<0.000000e+00> : vector<8x384xf32>
    %3 = tpu.matmul %0, %2, %cst {dimension_numbers = #tpu.dot_dimension_numbers<[1], [0], [0], [1], [0, 0, 1, 1], [], []>} : vector<8x16xf32>, vector<16x384xf32>, vector<8x384xf32> -> vector<8x384xf32>
    %c16 = arith.constant 16 : index
    %c0_5 = arith.constant 0 : index
    %4 = vector.load %arg2[%c16, %c0_5] : memref<288x384xf32, #tpu.memory_space<vmem>>, vector<1x384xf32>
    %5 = vector.broadcast %4 : vector<1x384xf32> to vector<8x384xf32>
    %6 = arith.addf %3, %5 : vector<8x384xf32>
    %c32 = arith.constant 32 : index
    %c0_6 = arith.constant 0 : index
    %7 = vector.load %arg2[%c32, %c0_6] : memref<288x384xf32, #tpu.memory_space<vmem>>, vector<128x256xf32>
    %cst_7 = arith.constant dense<0.000000e+00> : vector<8x256xf32>
    %8 = tpu.matmul %1, %7, %cst_7 {dimension_numbers = #tpu.dot_dimension_numbers<[1], [0], [0], [1], [0, 0, 1, 1], [], []>} : vector<8x128xf32>, vector<128x256xf32>, vector<8x256xf32> -> vector<8x256xf32>
    %9 = vector.extract_strided_slice %6 {offsets = [0, 0], sizes = [8, 256], strides = [1, 1]} : vector<8x384xf32> to vector<8x256xf32>
    %10 = arith.addf %9, %8 : vector<8x256xf32>
    %cst_8 = arith.constant 0.000000e+00 : f32
    %11 = vector.broadcast %cst_8 : f32 to vector<8x256xf32>
    %12 = arith.subf %11, %10 : vector<8x256xf32>
    %13 = math.exp %12 : vector<8x256xf32>
    %cst_9 = arith.constant 1.000000e+00 : f32
    %14 = vector.broadcast %cst_9 : f32 to vector<8x256xf32>
    %15 = arith.addf %14, %13 : vector<8x256xf32>
    %cst_10 = arith.constant 1.000000e+00 : f32
    %16 = vector.broadcast %cst_10 : f32 to vector<8x256xf32>
    %17 = arith.divf %16, %15 : vector<8x256xf32>
    %18 = vector.extract_strided_slice %17 {offsets = [0, 0], sizes = [8, 128], strides = [1, 1]} : vector<8x256xf32> to vector<8x128xf32>
    %19 = vector.extract_strided_slice %17 {offsets = [0, 128], sizes = [8, 128], strides = [1, 1]} : vector<8x256xf32> to vector<8x128xf32>
    %20 = arith.mulf %19, %1 : vector<8x128xf32>
    %c32_11 = arith.constant 32 : index
    %c256 = arith.constant 256 : index
    %21 = vector.load %arg2[%c32_11, %c256] : memref<288x384xf32, #tpu.memory_space<vmem>>, vector<128x128xf32>
    %cst_12 = arith.constant dense<0.000000e+00> : vector<8x128xf32>
    %22 = tpu.matmul %20, %21, %cst_12 {dimension_numbers = #tpu.dot_dimension_numbers<[1], [0], [0], [1], [0, 0, 1, 1], [], []>} : vector<8x128xf32>, vector<128x128xf32>, vector<8x128xf32> -> vector<8x128xf32>
    %23 = vector.extract_strided_slice %6 {offsets = [0, 256], sizes = [8, 128], strides = [1, 1]} : vector<8x384xf32> to vector<8x128xf32>
    %24 = arith.addf %23, %22 : vector<8x128xf32>
    %25 = math.tanh %24 : vector<8x128xf32>
    %cst_13 = arith.constant 1.000000e+00 : f32
    %26 = vector.broadcast %cst_13 : f32 to vector<8x128xf32>
    %27 = arith.subf %26, %18 : vector<8x128xf32>
    %28 = arith.mulf %27, %1 : vector<8x128xf32>
    %29 = arith.mulf %18, %25 : vector<8x128xf32>
    %30 = arith.addf %28, %29 : vector<8x128xf32>
    %c160 = arith.constant 160 : index
    %c0_14 = arith.constant 0 : index
    %31 = vector.load %arg2[%c160, %c0_14] : memref<288x384xf32, #tpu.memory_space<vmem>>, vector<128x128xf32>
    %cst_15 = arith.constant dense<0.000000e+00> : vector<8x128xf32>
    %32 = tpu.matmul %30, %31, %cst_15 {dimension_numbers = #tpu.dot_dimension_numbers<[1], [0], [0], [1], [0, 0, 1, 1], [], []>} : vector<8x128xf32>, vector<128x128xf32>, vector<8x128xf32> -> vector<8x128xf32>
    %c24 = arith.constant 24 : index
    %c0_16 = arith.constant 0 : index
    %33 = vector.load %arg2[%c24, %c0_16] : memref<288x384xf32, #tpu.memory_space<vmem>>, vector<1x128xf32>
    %34 = vector.broadcast %33 : vector<1x128xf32> to vector<8x128xf32>
    %35 = arith.addf %32, %34 : vector<8x128xf32>
    %cst_17 = arith.constant 0.000000e+00 : f32
    %36 = vector.broadcast %cst_17 : f32 to vector<8x128xf32>
    %37 = arith.subf %36, %35 : vector<8x128xf32>
    %38 = math.exp %37 : vector<8x128xf32>
    %cst_18 = arith.constant 1.000000e+00 : f32
    %39 = vector.broadcast %cst_18 : f32 to vector<8x128xf32>
    %40 = arith.addf %39, %38 : vector<8x128xf32>
    %cst_19 = arith.constant 1.000000e+00 : f32
    %41 = vector.broadcast %cst_19 : f32 to vector<8x128xf32>
    %42 = arith.divf %41, %40 : vector<8x128xf32>
    %c0_20 = arith.constant 0 : index
    %c0_21 = arith.constant 0 : index
    %43 = vector.load %arg3[%c0_20, %c0_21] : memref<8x128xf32, #tpu.memory_space<vmem>>, vector<8x128xf32>
    tpu.vector_store %arg3[%c0_20, %c0_21], %30 {strides = array<i32>} : memref<8x128xf32, #tpu.memory_space<vmem>>, vector<8x128xf32>,
    %c0_22 = arith.constant 0 : index
    %c0_23 = arith.constant 0 : index
    %44 = vector.load %arg4[%c0_22, %c0_23] : memref<8x128xf32, #tpu.memory_space<vmem>>, vector<8x128xf32>
    tpu.vector_store %arg4[%c0_22, %c0_23], %42 {strides = array<i32>} : memref<8x128xf32, #tpu.memory_space<vmem>>, vector<8x128xf32>,
    return
  }
}

</mosaic_0001>

<bundles_post_ra>
// kernel: _basic_gru_forward.1
= control target key start
LH: loop header
LB: loop body
LE: loop exit
PB: predicated region body
PF: predicated region fallthrough
CT: control target
= control target key end

     0   :  { %10 = vsyncpa [#allocation3], 0  ;;  %s991_s0 = inlined_call_operand.hbm [shape: f32[8,16], index: 0, kind: input, shape index: {}]   ;;  %s992_s1 = inlined_call_operand.hbm [shape: f32[8,128], index: 1, kind: input, shape index: {}, may-alias: {1,3}]   ;;  %s993_s2 = inlined_call_operand.hbm [shape: f32[288,384], index: 2, kind: input, shape index: {}]   ;;  %s994_s3 = inlined_call_operand.hbm [shape: f32[8,128], index: 3, kind: output, shape index: {0}, may-alias: {1,3}]   ;;  %s995_s4 = inlined_call_operand.vmem [shape: f32[8,128], index: 4, kind: output, shape index: {1}]  }
   0x1   :  { %11 = vsyncpa [#allocation6], 0 }
   0x2   :  { %12 = vsyncpa [#allocation4], 0  ;;  %s877_s15 = smov [#allocation5]   ;;  %s878_s17 = smov [#allocation2]  }
   0x3   :  { %s29_s16 = sshll.u32 %s877_s15, 4  ;;  %s19_s18 = sshll.u32 %s878_s17, 4  ;;  %s30_s16 = int_to_ptr.vmem [resolvable:$true] %s29_s16  ;;  %s20_s18 = int_to_ptr.vmem [resolvable:$true] %s19_s18 }
   0x4   :  { %s783_s21 = scalar_lea.hbm %s992_s1, 128 }
   0x5   :  { %p784_p0 = scmp.ne.s32.totalorder %s992_s1, %s783_s21  ;;  %p787_p1 = scmp.lt.u32.totalorder %s783_s21, %s992_s1 }
   0x7   :  { %p789_p2 = pnand %p787_p1, %p784_p0 }
   0x9   :  { %792 = shalt.err (!%p789_p2)
}
   0xa   :  { %s793_s26 = scalar_lea.vmem %s30_s16, 128  ;;  %p798_p4 = scmp.lt.s32.totalorder %s30_s16, %s30_s16 }
   0xb   :  { %p794_p3 = scmp.ne.s32.totalorder %s30_s16, %s793_s26  ;;  %p799_p5 = scmp.lt.s32.totalorder %s793_s26, %s793_s26 }
   0xd   :  { %p800_p6 = por %p799_p5, %p798_p4 }
   0xf   :  { %p801_p7 = pnand %p800_p6, %p794_p3 }
  0x11   :  { %804 = shalt.err (!%p801_p7)
}
  0x12   :  { %32 = dma.hbm_to_vmem [thread:$0]  %s992_s1, 128, %s30_s16, [#allocation6]  }
  0x13   :  { %s805_s5 = scalar_lea.hbm %s991_s0, 128 }
  0x14   :  { %p806_p8 = scmp.ne.s32.totalorder %s991_s0, %s805_s5  ;;  %p809_p9 = scmp.lt.u32.totalorder %s805_s5, %s991_s0 }
  0x16   :  { %p811_p10 = pnand %p809_p9, %p806_p8 }
  0x18   :  { %814 = shalt.err (!%p811_p10)
}
  0x19   :  { %s815_s10 = scalar_lea.vmem %s20_s18, 128  ;;  %p820_p12 = scmp.lt.s32.totalorder %s20_s18, %s20_s18 }
  0x1a   :  { %p816_p11 = scmp.ne.s32.totalorder %s20_s18, %s815_s10  ;;  %p821_p13 = scmp.lt.s32.totalorder %s815_s10, %s815_s10 }
  0x1c   :  { %p822_p0 = por %p821_p13, %p820_p12 }
  0x1e   :  { %p823_p1 = pnand %p822_p0, %p816_p11 }
  0x20   :  { %826 = shalt.err (!%p823_p1)
}
  0x21   :  { %22 = dma.hbm_to_vmem [thread:$0]  %s991_s0, 128, %s20_s18, [#allocation3]  }
  0x22   :  { %s879_s12 = smov [#allocation7]   ;;  %s827_s16 = scalar_lea.hbm %s993_s2, 13824 }
  0x23   :  { %s38_s13 = sshll.u32 %s879_s12, 4  ;;  %p828_p2 = scmp.ne.s32.totalorder %s993_s2, %s827_s16  ;;  %s39_s13 = int_to_ptr.vmem [resolvable:$true] %s38_s13 }
  0x24   :  { %p831_p3 = scmp.lt.u32.totalorder %s827_s16, %s993_s2 }
  0x26   :  { %p833_p4 = pnand %p831_p3, %p828_p2 }
  0x28   :  { %836 = shalt.err (!%p833_p4)
}
  0x29   :  { %s837_s22 = scalar_lea.vmem %s39_s13, 13824  ;;  %p842_p6 = scmp.lt.s32.totalorder %s39_s13, %s39_s13 }
  0x2a   :  { %p838_p5 = scmp.ne.s32.totalorder %s39_s13, %s837_s22  ;;  %p843_p7 = scmp.lt.s32.totalorder %s837_s22, %s837_s22 }
  0x2c   :  { %p844_p8 = por %p843_p7, %p842_p6 }
  0x2e   :  { %p845_p9 = pnand %p844_p8, %p838_p5 }
  0x30   :  { %848 = shalt.err (!%p845_p9)
}
  0x31   :  { %s880_s0 = smov 384   ;;  %s881_s18 = smov 24  }
  0x32   :  { %44 = dma.hbm_to_vmem [thread:$0]  %s993_s2, 13824, %s39_s13, [#allocation6], %s880_s0, %s880_s0, %s881_s18  }
  0x33   :  { %871 = dma.done.wait [#allocation3], 128  }
  0x34   :  { %872 = vsyncadd [#allocation3], 4294967168 }
  0x35   :  { %873 = dma.done.wait [#allocation6], 13952  }
  0x36   :  { %874 = vsyncadd [#allocation6], 4294953344  ;;  %v882_v0 = vmov 0.0   ;;  %v226_v1 = vld [vmem:[#allocation7 + $0x68] sm:$0xff]  ;;  %v228_v2 = vld [vmem:[#allocation7 + $0x80] sm:$0xff]  ;;  %vm80_vm0 = vcmask 130048  }
  0x37   :  { %148 = vmatprep.mubr.f32.mxu1 %v882_v0  ;;  %321 = vmatprep.mubr.f32.mxu0 %v882_v0  ;;  %v225_v3 = vld [vmem:[#allocation7 + $0x60] sm:$0xff]  ;;  %v673_v4 = vpack.c.bf16 %v228_v2, %v226_v1  ;;  %v227_v5 = vld [vmem:[#allocation7 + $0x78] sm:$0xff]  ;;  %v232_v7 = vld [vmem:[#allocation7 + $0xb0] sm:$0xff]  ;;  %v883_v59 = vmov 0.0|0.0   ;;  %vm884_vm1 = vmmov 0   ;;  %s885_s2 = smov [#allocation8]  }
  0x38   :  { %v230_v6 = vld [vmem:[#allocation7 + $0x98] sm:$0xff]  ;;  %v675_v8 = vpack.c.bf16 %v227_v5, %v225_v3  ;;  %v229_v10 = vld [vmem:[#allocation7 + $0x90] sm:$0xff]  ;;  %v231_v11 = vld [vmem:[#allocation7 + $0xa8] sm:$0xff]  ;;  %s536_s25 = sshll.u32 %s885_s2, 4  ;;  %s537_s25 = int_to_ptr.vmem [resolvable:$true] %s536_s25 }
  0x39   :  { %v677_v9 = vpack.c.bf16 %v232_v7, %v230_v6  ;;  %v234_v12 = vld [vmem:[#allocation7 + $0xc8] sm:$0xff]  ;;  %674 = vmatprep.subr.bf16.mxu0 %v673_v4  ;;  %v236_v13 = vld [vmem:[#allocation7 + $0xe0] sm:$0xff]  ;;  %v679_v14 = vpack.c.bf16 %v231_v11, %v229_v10  ;;  %v235_v17 = vld [vmem:[#allocation7 + $0xd8] sm:$0xff]  ;;  %s849_s26 = scalar_lea.vmem %s537_s25, 128  ;;  %p854_p11 = scmp.lt.s32.totalorder %s537_s25, %s537_s25 }
  0x3a   :  { %676 = vmatpush1.bf16.msra.mxu0 %v675_v8  ;;  %v681_v15 = vpack.c.bf16 %v236_v13, %v234_v12  ;;  %v233_v16 = vld [vmem:[#allocation7 + $0xc0] sm:$0xff]  ;;  %v238_v18 = vld [vmem:[#allocation7 + $0xf8] sm:$0xff]  ;;  %v240_v19 = vld [vmem:[#allocation7 + $0x110] sm:$0xff]  ;;  %p850_p10 = scmp.ne.s32.totalorder %s537_s25, %s849_s26  ;;  %p855_p12 = scmp.lt.s32.totalorder %s849_s26, %s849_s26 }
  0x3b   :  { %678 = vmatprep.subr.bf16.mxu0 %v677_v9  ;;  %v683_v20 = vpack.c.bf16 %v235_v17, %v233_v16  ;;  %v237_v21 = vld [vmem:[#allocation7 + $0xf0] sm:$0xff]  ;;  %v57_v22 = vld [vmem:[#allocation7 + $0x8] sm:$0xff]  ;;  %v685_v23 = vpack.c.bf16 %v240_v19, %v238_v18  ;;  %v60_v26 = vld [vmem:[#allocation7 + $0x20] sm:$0xff] }
  0x3c   :  { %v239_v24 = vld [vmem:[#allocation7 + $0x108] sm:$0xff]  ;;  %v244_v27 = vld [vmem:[#allocation7 + $0x140] sm:$0xff]  ;;  %v666_v28 = vpack.c.bf16 %v60_v26, %v57_v22  ;;  %v59_v30 = vld [vmem:[#allocation7 + $0x18] sm:$0xff]  ;;  %p856_p13 = por %p855_p12, %p854_p11 }
  0x3d   :  { %v242_v25 = vld [vmem:[#allocation7 + $0x128] sm:$0xff]  ;;  %v56_v29 = vld [vmem:[#allocation7] sm:$0xff]  ;;  %v687_v32 = vpack.c.bf16 %v239_v24, %v237_v21  ;;  %v243_v35 = vld [vmem:[#allocation7 + $0x138] sm:$0xff] }
  0x3e   :  { %680 = vmatpush1.bf16.msra.mxu0 %v679_v14  ;;  %v668_v31 = vpack.c.bf16 %v59_v30, %v56_v29  ;;  %667 = vmatprep.subr.bf16.mxu1 %v666_v28  ;;  %v689_v33 = vpack.c.bf16 %v244_v27, %v242_v25  ;;  %v241_v34 = vld [vmem:[#allocation7 + $0x120] sm:$0xff]  ;;  %v54_v36 = vld [vmem:[#allocation2] sm:$0xff]  ;;  %v246_v37 = vld [vmem:[#allocation7 + $0x158] sm:$0xff]  ;;  %p857_p0 = pnand %p856_p13, %p850_p10 }
  0x3f   :  { %682 = vmatprep.subr.bf16.mxu0 %v681_v15  ;;  %v248_v38 = vld [vmem:[#allocation7 + $0x170] sm:$0xff]  ;;  %v691_v39 = vpack.c.bf16 %v243_v35, %v241_v34  ;;  %v247_v42 = vld [vmem:[#allocation7 + $0x168] sm:$0xff]  ;;  %v252_v44 = vld [vmem:[#allocation7 + $0x1a0] sm:$0xff] }
  0x40   :  { %669 = vmatpush1.bf16.msra.mxu1 %v668_v31  ;;  %v693_v40 = vpack.c.bf16 %v248_v38, %v246_v37  ;;  %v245_v41 = vld [vmem:[#allocation7 + $0x150] sm:$0xff]  ;;  %v250_v43 = vld [vmem:[#allocation7 + $0x188] sm:$0xff]  ;;  %v249_v47 = vld [vmem:[#allocation7 + $0x180] sm:$0xff] }
  0x41   :  { %v695_v45 = vpack.c.bf16 %v247_v42, %v245_v41  ;;  %v697_v46 = vpack.c.bf16 %v252_v44, %v250_v43  ;;  %v251_v48 = vld [vmem:[#allocation7 + $0x198] sm:$0xff]  ;;  %v256_v50 = vld [vmem:[#allocation7 + $0x1d0] sm:$0xff]  ;;  %v255_v54 = vld [vmem:[#allocation7 + $0x1c8] sm:$0xff]  ;;  %670 = vmatprep.subr.bf16.mxu1 %v883_v59 }
  0x42   :  { %684 = vmatpush1.bf16.msra.mxu0 %v683_v20  ;;  %v254_v49 = vld [vmem:[#allocation7 + $0x1b8] sm:$0xff]  ;;  %v699_v51 = vpack.c.bf16 %v251_v48, %v249_v47  ;;  %v253_v53 = vld [vmem:[#allocation7 + $0x1b0] sm:$0xff]  ;;  %v61_v58 = vld [vmem:[#allocation7 + $0x28] sm:$0xff] }
  0x43   :  { %686 = vmatprep.subr.bf16.mxu0 %v685_v23  ;;  %550 = vmatmul.mubr.msk.f32.vlgmr.msra.gmra.mrb[0].mxu1 %vm80_vm0, %v54_v36  ;;  %v701_v52 = vpack.c.bf16 %v256_v50, %v254_v49  ;;  %v703_v55 = vpack.c.bf16 %v255_v54, %v253_v53  ;;  %v950_v56 = vld [vmem:[#allocation5] sm:$0xff]  ;;  %v58_v57 = vld [vmem:[#allocation7 + $0x10] sm:$0xff]  ;;  %v344_v62 = vld [vmem:[#allocation7 + $0x88] sm:$0xff] }
  0x44   :  { %v671_v60 = vpack.c.bf16 %v61_v58, %v58_v57  ;;  %v343_v61 = vld [vmem:[#allocation7 + $0x70] sm:$0xff]  ;;  %593 = vmatprep.mubr.msk.f32.mxu1 %vm884_vm1, %v882_v0  ;;  %v345_v1 = vld [vmem:[#allocation7 + $0xa0] sm:$0xff]  ;;  %v346_v2 = vld [vmem:[#allocation7 + $0xb8] sm:$0xff] }
  0x45   :  { %v706_v63 = vpack.c.bf16 %v344_v62, %v343_v61  ;;  %v709_v3 = vpack.c.bf16 %v346_v2, %v345_v1  ;;  %v347_v4 = vld [vmem:[#allocation7 + $0xd0] sm:$0xff]  ;;  %v348_v5 = vld [vmem:[#allocation7 + $0xe8] sm:$0xff]  ;;  %v349_v7 = vld [vmem:[#allocation7 + $0x100] sm:$0xff] }
  0x46   :  { %688 = vmatpush1.bf16.msra.mxu0 %v687_v32  ;;  %672 = vmatpush3.bf16.msra.mxu1 %v671_v60  ;;  %v712_v6 = vpack.c.bf16 %v348_v5, %v347_v4  ;;  %v350_v8 = vld [vmem:[#allocation7 + $0x118] sm:$0xff]  ;;  %v351_v10 = vld [vmem:[#allocation7 + $0x130] sm:$0xff]  ;;  %v352_v11 = vld [vmem:[#allocation7 + $0x148] sm:$0xff] }
  0x47   :  { %690 = vmatprep.subr.bf16.mxu0 %v689_v33  ;;  %705 = vmatprep.subr.bf16.mxu1 %v883_v59  ;;  %v715_v9 = vpack.c.bf16 %v350_v8, %v349_v7  ;;  %v353_v12 = vld [vmem:[#allocation7 + $0x160] sm:$0xff]  ;;  %v354_v13 = vld [vmem:[#allocation7 + $0x178] sm:$0xff]  ;;  %v355_v15 = vld [vmem:[#allocation7 + $0x190] sm:$0xff]  ;;  %v65_v33 = vlaneseq }
  0x48   :  { %v721_v14 = vpack.c.bf16 %v354_v13, %v353_v12  ;;  %v356_v16 = vld [vmem:[#allocation7 + $0x1a8] sm:$0xff]  ;;  %v357_v18 = vld [vmem:[#allocation7 + $0x1c0] sm:$0xff]  ;;  %v358_v19 = vld [vmem:[#allocation7 + $0x1d8] sm:$0xff] }
  0x49   :  { %594 = vmatmul.mubr.msk.f32.vlgmr.msra.gmra.mrb[2].mxu1 %vm80_vm0, %v54_v36  ;;  %v724_v17 = vpack.c.bf16 %v356_v16, %v355_v15  ;;  %v727_v20 = vpack.c.bf16 %v358_v19, %v357_v18  ;;  %v435_v21 = vld [vmem:[#allocation7 + $0x1e0] sm:$0xff]  ;;  %v436_v22 = vld [vmem:[#allocation7 + $0x1f8] sm:$0xff]  ;;  %v437_v23 = vld [vmem:[#allocation7 + $0x210] sm:$0xff]  ;;  %v66_v36 = vshrl.u32 %v65_v33, 7 }
  0x4a   :  { %692 = vmatpush1.bf16.msra.mxu0 %v691_v39  ;;  %707 = vmatpush3.bf16.msra.mxu1 %v706_v63  ;;  %v730_v24 = vpack.c.bf16 %v436_v22, %v435_v21  ;;  %v438_v25 = vld [vmem:[#allocation7 + $0x228] sm:$0xff]  ;;  %v439_v27 = vld [vmem:[#allocation7 + $0x240] sm:$0xff]  ;;  %v440_v28 = vld [vmem:[#allocation7 + $0x258] sm:$0xff] }
  0x4b   :  { %694 = vmatprep.subr.bf16.mxu0 %v693_v40  ;;  %628 = vmatprep.mubr.msk.f32.mxu1 %vm884_vm1, %v882_v0  ;;  %v733_v26 = vpack.c.bf16 %v438_v25, %v437_v23  ;;  %v736_v29 = vpack.c.bf16 %v440_v28, %v439_v27  ;;  %v441_v30 = vld [vmem:[#allocation7 + $0x270] sm:$0xff]  ;;  %v442_v31 = vld [vmem:[#allocation7 + $0x288] sm:$0xff]  ;;  %v67_v37 = vsub.s32 0, %v66_v36  ;;  %v71_v39 = vsub.s32 1, %v66_v36  ;;  %v443_v54 = vld [vmem:[#allocation7 + $0x2a0] sm:$0xff] }
  0x4c   :  { %708 = vmatprep.subr.bf16.mxu1 %v883_v59  ;;  %v739_v32 = vpack.c.bf16 %v442_v31, %v441_v30  ;;  %v63_v38 = vld [vmem:[#allocation7 + $0x30] ss:$8 sm:$0x7]  ;;  %v446_v60 = vld [vmem:[#allocation7 + $0x2e8] sm:$0xff] }
  0x4d   :  { %v68_v40 = vrot.slane %v63_v38, %v67_v37  ;;  %v72_v41 = vrot.slane %v63_v38, %v71_v39  ;;  %v445_v58 = vld [vmem:[#allocation7 + $0x2d0] sm:$0xff]  ;;  %v447_v62 = vld [vmem:[#allocation7 + $0x300] sm:$0xff]  ;;  %v448_v63 = vld [vmem:[#allocation7 + $0x318] sm:$0xff] }
  0x4e   :  { %696 = vmatpush1.bf16.msra.mxu0 %v695_v45  ;;  %710 = vmatpush3.bf16.msra.mxu1 %v709_v3  ;;  %v745_v61 = vpack.c.bf16 %v446_v60, %v445_v58  ;;  %v748_v1 = vpack.c.bf16 %v448_v63, %v447_v62  ;;  %v449_v2 = vld [vmem:[#allocation7 + $0x330] sm:$0xff]  ;;  %v450_v3 = vld [vmem:[#allocation7 + $0x348] sm:$0xff] }
  0x4f   :  { %698 = vmatprep.subr.bf16.mxu0 %v697_v46  ;;  %711 = vmatprep.subr.bf16.mxu1 %v883_v59  ;;  %v751_v4 = vpack.c.bf16 %v450_v3, %v449_v2 }
  0x52   :  { %700 = vmatpush1.bf16.msra.mxu0 %v699_v51  ;;  %713 = vmatpush3.bf16.msra.mxu1 %v712_v6 }
  0x53   :  { %702 = vmatprep.subr.bf16.mxu0 %v701_v52  ;;  %714 = vmatprep.subr.bf16.mxu1 %v883_v59 }
  0x56   :  { %704 = vmatpush1.bf16.msra.mxu0 %v703_v55  ;;  %716 = vmatpush3.bf16.msra.mxu1 %v715_v9  ;;  %v444_v55 = vld [vmem:[#allocation7 + $0x2b8] sm:$0xff]  ;;  %v75_v9 = vsub.s32 2, %v66_v36 }
  0x57   :  { %729 = vmatprep.subr.bf16.mxu0 %v883_v59  ;;  %717 = vmatprep.subr.bf16.mxu1 %v883_v59  ;;  %v742_v57 = vpack.c.bf16 %v444_v55, %v443_v54 }
  0x59   :  { %322 = vmatmul.mubr.f32.vlgmr.msra.gmra.mrb[0].mxu0 %v950_v56 }
  0x5a   :  { %663 = vmatprep.mubr.msk.f32.mxu0 %vm884_vm1, %v882_v0  ;;  %v718_v0 = vpack.c.bf16 %v352_v11, %v351_v10  ;;  %731 = vmatpush3.bf16.msra.mxu0 %v730_v24  ;;  %v76_v10 = vrot.slane %v63_v38, %v75_v9 }
  0x5b   :  { %732 = vmatprep.subr.bf16.mxu0 %v883_v59 }
  0x5c   :  { %719 = vmatpush3.bf16.msra.mxu1 %v718_v0 }
  0x5d   :  { %720 = vmatprep.subr.bf16.mxu1 %v883_v59 }
  0x5e   :  { %734 = vmatpush3.bf16.msra.mxu0 %v733_v26 }
  0x5f   :  { %735 = vmatprep.subr.bf16.mxu0 %v883_v59 }
  0x60   :  { %722 = vmatpush3.bf16.msra.mxu1 %v721_v14 }
  0x61   :  { %723 = vmatprep.subr.bf16.mxu1 %v883_v59 }
  0x62   :  { %737 = vmatpush3.bf16.msra.mxu0 %v736_v29 }
  0x63   :  { %738 = vmatprep.subr.bf16.mxu0 %v883_v59 }
  0x64   :  { %725 = vmatpush3.bf16.msra.mxu1 %v724_v17 }
  0x65   :  { %726 = vmatprep.subr.bf16.mxu1 %v883_v59 }
  0x66   :  { %740 = vmatpush3.bf16.msra.mxu0 %v739_v32 }
  0x67   :  { %741 = vmatprep.subr.bf16.mxu0 %v883_v59 }
  0x68   :  { %728 = vmatpush3.bf16.msra.mxu1 %v727_v20 }
  0x6a   :  { %743 = vmatpush3.bf16.msra.mxu0 %v742_v57 }
  0x6b   :  { %744 = vmatprep.subr.bf16.mxu0 %v883_v59 }
  0x6e   :  { %746 = vmatpush3.bf16.msra.mxu0 %v745_v61 }
  0x6f   :  { %747 = vmatprep.subr.bf16.mxu0 %v883_v59 }
  0x72   :  { %749 = vmatpush3.bf16.msra.mxu0 %v748_v1 }
  0x73   :  { %750 = vmatprep.subr.bf16.mxu0 %v883_v59 }
  0x76   :  { %752 = vmatpush3.bf16.msra.mxu0 %v751_v4 }
 0x116   :  { %v150_v34 = vpop.f32.mrb[0].mxu1 }
 0x117   :  { %v152_v35 = vpop.f32.mrb[1].mxu1  ;;  %v151_v42 = vadd.f32 %v150_v34, %v68_v40 }
 0x118   :  { %v153_v43 = vadd.f32 %v152_v35, %v72_v41 }
 0x12c   :  { %v323_v44 = vpop.f32.mrb[0].mxu0 }
 0x12d   :  { %v328_v45 = vadd.f32 %v323_v44, %v151_v42  ;;  %v325_v46 = vpop.f32.mrb[1].mxu0 }
 0x12e   :  { %v329_v47 = vadd.f32 %v325_v46, %v153_v43 }
 0x12f   :  { %v330_v5 = vsub.f32 0.0, %v328_v45 }
 0x130   :  { %v331_v48 = vsub.f32 0.0, %v329_v47 }
 0x131   :  { %v332_v6 = vmul.f32 1.442695, %v330_v5 }
 0x132   :  { %v334_v49 = vmul.f32 1.442695, %v331_v48 }
 0x134   :  { %769 = vpow2.f32 %v334_v49 }
 0x13e   :  { %v770_v50 = vpop.eup %769 }
 0x13f   :  { %v337_v51 = vadd.f32 1.0, %v770_v50 }
 0x141   :  { %771 = vrcp.f32 %v337_v51 }
 0x142   :  { %773 = vpow2.f32 %v332_v6 }
 0x14b   :  { %v772_v52 = vpop.eup %771 }
 0x14c   :  { %v342_v53 = vmul.f32 %v772_v52, %v950_v56  ;;  %v774_v7 = vpop.eup %773 }
 0x14d   :  { %v336_v8 = vadd.f32 1.0, %v774_v7 }
 0x14e   :  { %629 = vmatmul.mubr.f32.vlgmr.msra.gmra.mrb[2].mxu1 %v342_v53 }
 0x14f   :  { %775 = vrcp.f32 %v336_v8 }
 0x159   :  { %v776_v13 = vpop.eup %775 }
 0x15a   :  { %v431_v14 = vsub.f32 1.0, %v776_v13 }
 0x15c   :  { %v432_v16 = vmul.f32 %v431_v14, %v950_v56 }
 0x221   :  { %v425_v11 = vpop.f32.mrb[2].mxu1 }
 0x222   :  { %v757_v0 = vadd.f32 %v425_v11, %v76_v10  ;;  %v630_v12 = vpop.f32.mrb[3].mxu1 }
 0x224   :  { %777 = vtanh.f32 %v757_v0 }
 0x22e   :  { %v778_v15 = vpop.eup %777 }
 0x22f   :  { %v433_v17 = vmul.f32 %v778_v15, %v776_v13 }
 0x231   :  { %v434_v59 = vadd.f32 %v433_v17, %v432_v16 }
 0x233   :  { %664 = vmatmul.mubr.f32.vlgmr.msra.gmra.mrb[2].mxu0 %v434_v59  ;;  %528 = vst [vmem:[#allocation8] sm:$0xff] %v434_v59 }
 0x234   :  { %860 = shalt.err (!%p857_p0)
}
 0x235   :  { %s861_s29 = scalar_lea.hbm %s994_s3, 128 }
 0x236   :  { %p862_p1 = scmp.ne.s32.totalorder %s994_s3, %s861_s29  ;;  %p865_p2 = scmp.lt.u32.totalorder %s861_s29, %s994_s3 }
 0x238   :  { %p867_p3 = pnand %p865_p2, %p862_p1 }
 0x23a   :  { %870 = shalt.err (!%p867_p3)
}
 0x23b   :  { %539 = dma.vmem_to_hbm [thread:$0]  %s537_s25, 128, %s994_s3, [#allocation4]   ;;  %v451_v56 = vld [vmem:[#allocation7 + $0x48] ss:$0 sm:$0xff] }
 0x306   :  { %v518_v18 = vpop.f32.mrb[2].mxu0 }
 0x307   :  { %v519_v19 = vadd.f32 %v518_v18, %v451_v56  ;;  %v665_v20 = vpop.f32.mrb[3].mxu0 }
 0x309   :  { %v522_v21 = vsub.f32 0.0, %v519_v19 }
 0x30b   :  { %v523_v22 = vmul.f32 1.442695, %v522_v21 }
 0x30d   :  { %779 = vpow2.f32 %v523_v22 }
 0x317   :  { %v780_v23 = vpop.eup %779 }
 0x318   :  { %v525_v24 = vadd.f32 1.0, %v780_v23 }
 0x31a   :  { %781 = vrcp.f32 %v525_v24 }
 0x324   :  { %v782_v25 = vpop.eup %781 }
 0x325   :  { %529 = vst [vmem:[%s995_s4] sm:$0xff] %v782_v25 }
 0x326   :  { %875 = dma.done.wait [#allocation4], 128  }
 0x327   :  { %876 = vsyncadd [#allocation4], 4294967168 }
 0x328   :  { %547 = vsyncpa [#allocation3], 1 }
 0x329   :  { %548 = vsyncpa [#allocation6], 1 }
 0x32a   :  { %549 = vsyncpa [#allocation4], 1 }

</bundles_post_ra>
